<compile_context>
chip_gen: v7x
topology: tpu7x:2x2x1
jax: 0.10.0
libtpu: 0.0.40
codegen_flags: <defaults>
</compile_context>

<pallas_src>
import jax
import jax.numpy as jnp
from jax.experimental import pallas as pl
from jax.experimental.pallas import tpu as pltpu


def _round_up(x, m):
    return (x + m - 1) // m * m


# ----------------------------------------------------------------------------
# Fused MLP kernel: all layers in one pallas_call invocation per batch tile
# ----------------------------------------------------------------------------
def _mlp_kernel(x_ref, w0_ref, w_ref, b_ref, o_ref):
    # x_ref : (bm, n_in)       f32 raw input rows (no lane padding)
    # w0_ref: (n_in, Dp)       bf16 first-layer weight, stored (in, out)
    # w_ref : (L-1, Dp, Dp)    bf16 stacked remaining weights, stored (in, out)
    # b_ref : (L, 1, Dp)       f32 stacked biases (all layers)
    # o_ref : (bm, n_out)      f32 output (exact width; no padded lanes)
    n_rest = w_ref.shape[0]

    # First layer: un-padded (bm, n_in) x (n_in, Dp) -> (bm, Dp), then ReLU.
    h = x_ref[...].astype(jnp.bfloat16)
    y = jnp.dot(h, w0_ref[...], preferred_element_type=jnp.float32)  # MXU
    y = jnp.maximum(y + b_ref[0], 0.0)                               # f32
    h = y.astype(jnp.bfloat16)

    # Remaining layers (hidden layers + output layer), statically unrolled.
    for li in range(n_rest):
        y = jnp.dot(h, w_ref[li], preferred_element_type=jnp.float32)
        y = y + b_ref[li + 1]
        if li != n_rest - 1:
            y = jnp.maximum(y, 0.0)
            h = y.astype(jnp.bfloat16)

    # Only the first n_out lanes are meaningful (rest are zero-padded weights).
    o_ref[...] = y[:, : o_ref.shape[1]].astype(o_ref.dtype)


# ----------------------------------------------------------------------------
# Parameter construction (mirrors nn.Linear default init scale; W is (in,out))
# ----------------------------------------------------------------------------
def init_params(key, n_in, n_out, hidden_w, hid_depth):
    params = []
    dims = [n_in] + [hidden_w] * (hid_depth + 1) + [n_out]
    for d_in, d_out in zip(dims[:-1], dims[1:]):
        key, kw, kb = jax.random.split(key, 3)
        bound = 1.0 / jnp.sqrt(jnp.float32(d_in))
        w = jax.random.uniform(kw, (d_in, d_out), jnp.float32, -bound, bound)
        b = jax.random.uniform(kb, (d_out,), jnp.float32, -bound, bound)
        params.append((w, b))
    return params


# ----------------------------------------------------------------------------
# One-time packing: first-layer weight kept separate (un-padded K = n_in);
# remaining layers stacked + zero-padded to a common lane-dense width Dp.
# ----------------------------------------------------------------------------
def pack_params(params):
    n_in = params[0][0].shape[0]
    out_dims = [w.shape[1] for w, _ in params]
    dp = _round_up(max(out_dims), 128)       # lane-dense common hidden width
    n_layers = len(params)

    w0 = jnp.zeros((n_in, dp), jnp.bfloat16)
    w0 = w0.at[:, : out_dims[0]].set(params[0][0].astype(jnp.bfloat16))

    w_rest = jnp.zeros((n_layers - 1, dp, dp), jnp.bfloat16)
    b_stack = jnp.zeros((n_layers, 1, dp), jnp.float32)
    b_stack = b_stack.at[0, 0, : out_dims[0]].set(params[0][1].astype(jnp.float32))
    for li in range(1, n_layers):
        w, b = params[li]
        d_in, d_out = w.shape
        w_rest = w_rest.at[li - 1, :d_in, :d_out].set(w.astype(jnp.bfloat16))
        b_stack = b_stack.at[li, 0, :d_out].set(b.astype(jnp.float32))
    return w0, w_rest, b_stack, dp


# ----------------------------------------------------------------------------
# Forward pass of Net: ONE fused pallas_call for the whole MLP
# ----------------------------------------------------------------------------
def net_forward(w0, w_rest, b_stack, x, n_out):
    B, n_in = x.shape
    x = x.astype(jnp.float32)                 # mirrors x.float() in the module

    # Tiny row-only pad (<=15 rows) for sublane/packing-friendly batch tiles.
    # No lane padding of the input -- it stays (bp, n_in).
    bp = _round_up(max(B, 16), 16)
    if bp != B:
        x = jnp.pad(x, ((0, bp - B), (0, 0)))

    if bp <= 1024:
        bm = bp                               # single grid step
    else:
        # Large-B: big tiles to amortize per-step overhead, but keep >=2
        # "parallel" grid steps so v7x's 2 TensorCores both get work.
        bm = min(2048, _round_up(pl.cdiv(bp, 2), 512))
    grid = (pl.cdiv(bp, bm),)                 # last block may be partial; rows
                                              # are independent, OOB rows are
                                              # dropped / sliced off below.

    out = pl.pallas_call(
        _mlp_kernel,
        out_shape=jax.ShapeDtypeStruct((bp, n_out), jnp.float32),
        grid_spec=pltpu.PrefetchScalarGridSpec(
            num_scalar_prefetch=0,
            grid=grid,
            in_specs=[
                pl.BlockSpec((bm, n_in), lambda i: (i, 0)),          # raw input rows
                pl.BlockSpec(w0.shape, lambda i: (0, 0)),            # first-layer W
                pl.BlockSpec(w_rest.shape, lambda i: (0, 0, 0)),     # stacked W
                pl.BlockSpec(b_stack.shape, lambda i: (0, 0, 0)),    # stacked b
            ],
            out_specs=pl.BlockSpec((bm, n_out), lambda i: (i, 0)),   # exact-width out
        ),
        compiler_params=pltpu.CompilerParams(
            dimension_semantics=("parallel",),
        ),
    )(x, w0, w_rest, b_stack)
    return out[:B]


# ----------------------------------------------------------------------------
# Reference (plain JAX) with matching numerics: bf16 weights/acts, f32 accum
# ----------------------------------------------------------------------------
def net_forward_ref(params, x):
    h = x.astype(jnp.float32).astype(jnp.bfloat16)
    n_layers = len(params)
    y = None
    for li, (w, b) in enumerate(params):
        y = jnp.dot(h, w.astype(jnp.bfloat16),
                    preferred_element_type=jnp.float32) + b
        if li != n_layers - 1:
            y = jnp.maximum(y, 0.0)
            h = y.astype(jnp.bfloat16)
    return y


if __name__ == "__main__":
    # Small shapes consistent with the module:
    #   n_in=8 (state+action dim), hidden_w=32, hid_depth=2, n_out=6, batch=8
    n_in, n_out, hidden_w, hid_depth, batch = 8, 6, 32, 2, 8

    key = jax.random.PRNGKey(0)
    key_p, key_x = jax.random.split(key)
    params = init_params(key_p, n_in, n_out, hidden_w, hid_depth)
    x = jax.random.normal(key_x, (batch, n_in), jnp.float32)

    w0, w_rest, b_stack, _dp = pack_params(params)
    out = net_forward(w0, w_rest, b_stack, x, n_out)
    out = jax.block_until_ready(out)

    ref = net_forward_ref(params, x)
    assert out.shape == (batch, n_out)
    assert jnp.allclose(out, ref, atol=1e-3, rtol=1e-3), "mismatch vs reference"

    print("KERNEL_OK")
</pallas_src>

<mosaic_0001>
module attributes {stable_mosaic.version = 11 : i64} {
  func.func @_mlp_kernel(%arg0: i32, %arg1: memref<16x8xf32, #tpu.memory_space<vmem>>, %arg2: memref<8x128xbf16, #tpu.memory_space<vmem>>, %arg3: memref<3x128x128xbf16, #tpu.memory_space<vmem>>, %arg4: memref<4x1x128xf32, #tpu.memory_space<vmem>>, %arg5: memref<16x6xf32, #tpu.memory_space<vmem>>) attributes {dimension_semantics = [#tpu.dimension_semantics<parallel>], iteration_bounds = array<i64: 1>, scalar_prefetch = 0 : i64, scratch_operands = 0 : i64, tpu.core_type = #tpu.core_type<tc>, window_params = [{transform_indices = @transform_0, window_bounds = array<i64: 16, 8>}, {pipeline_mode = #tpu.pipeline_mode<synchronous>, transform_indices = @transform_1, window_bounds = array<i64: 8, 128>}, {pipeline_mode = #tpu.pipeline_mode<synchronous>, transform_indices = @transform_2, window_bounds = array<i64: 3, 128, 128>}, {pipeline_mode = #tpu.pipeline_mode<synchronous>, transform_indices = @transform_3, window_bounds = array<i64: 4, 1, 128>}, {transform_indices = @transform_4, window_bounds = array<i64: 16, 6>}]} {
    %c0 = arith.constant 0 : index
    %c0_0 = arith.constant 0 : index
    %0 = vector.load %arg1[%c0, %c0_0] : memref<16x8xf32, #tpu.memory_space<vmem>>, vector<16x8xf32>
    %1 = arith.truncf %0 : vector<16x8xf32> to vector<16x8xbf16>
    %c0_1 = arith.constant 0 : index
    %c0_2 = arith.constant 0 : index
    %2 = vector.load %arg2[%c0_1, %c0_2] : memref<8x128xbf16, #tpu.memory_space<vmem>>, vector<8x128xbf16>
    %cst = arith.constant dense<0.000000e+00> : vector<16x128xf32>
    %3 = tpu.matmul %1, %2, %cst {dimension_numbers = #tpu.dot_dimension_numbers<[1], [0], [0], [1], [0, 0, 1, 1], [], []>} : vector<16x8xbf16>, vector<8x128xbf16>, vector<16x128xf32> -> vector<16x128xf32>
    %c0_3 = arith.constant 0 : index
    %c0_4 = arith.constant 0 : index
    %c0_5 = arith.constant 0 : index
    %4 = vector.load %arg4[%c0_3, %c0_4, %c0_5] : memref<4x1x128xf32, #tpu.memory_space<vmem>>, vector<1x1x128xf32>
    %5 = vector.shape_cast %4 : vector<1x1x128xf32> to vector<1x128xf32>
    %6 = vector.broadcast %5 : vector<1x128xf32> to vector<16x128xf32>
    %7 = arith.addf %3, %6 : vector<16x128xf32>
    %cst_6 = arith.constant 0.000000e+00 : f32
    %8 = vector.broadcast %cst_6 : f32 to vector<16x128xf32>
    %9 = arith.maximumf %7, %8 : vector<16x128xf32>
    %10 = arith.truncf %9 : vector<16x128xf32> to vector<16x128xbf16>
    %c0_7 = arith.constant 0 : index
    %c0_8 = arith.constant 0 : index
    %c0_9 = arith.constant 0 : index
    %11 = vector.load %arg3[%c0_7, %c0_8, %c0_9] : memref<3x128x128xbf16, #tpu.memory_space<vmem>>, vector<1x128x128xbf16>
    %12 = vector.shape_cast %11 : vector<1x128x128xbf16> to vector<128x128xbf16>
    %cst_10 = arith.constant dense<0.000000e+00> : vector<16x128xf32>
    %13 = tpu.matmul %10, %12, %cst_10 {dimension_numbers = #tpu.dot_dimension_numbers<[1], [0], [0], [1], [0, 0, 1, 1], [], []>} : vector<16x128xbf16>, vector<128x128xbf16>, vector<16x128xf32> -> vector<16x128xf32>
    %c1 = arith.constant 1 : index
    %c0_11 = arith.constant 0 : index
    %c0_12 = arith.constant 0 : index
    %14 = vector.load %arg4[%c1, %c0_11, %c0_12] : memref<4x1x128xf32, #tpu.memory_space<vmem>>, vector<1x1x128xf32>
    %15 = vector.shape_cast %14 : vector<1x1x128xf32> to vector<1x128xf32>
    %16 = vector.broadcast %15 : vector<1x128xf32> to vector<16x128xf32>
    %17 = arith.addf %13, %16 : vector<16x128xf32>
    %cst_13 = arith.constant 0.000000e+00 : f32
    %18 = vector.broadcast %cst_13 : f32 to vector<16x128xf32>
    %19 = arith.maximumf %17, %18 : vector<16x128xf32>
    %20 = arith.truncf %19 : vector<16x128xf32> to vector<16x128xbf16>
    %c1_14 = arith.constant 1 : index
    %c0_15 = arith.constant 0 : index
    %c0_16 = arith.constant 0 : index
    %21 = vector.load %arg3[%c1_14, %c0_15, %c0_16] : memref<3x128x128xbf16, #tpu.memory_space<vmem>>, vector<1x128x128xbf16>
    %22 = vector.shape_cast %21 : vector<1x128x128xbf16> to vector<128x128xbf16>
    %cst_17 = arith.constant dense<0.000000e+00> : vector<16x128xf32>
    %23 = tpu.matmul %20, %22, %cst_17 {dimension_numbers = #tpu.dot_dimension_numbers<[1], [0], [0], [1], [0, 0, 1, 1], [], []>} : vector<16x128xbf16>, vector<128x128xbf16>, vector<16x128xf32> -> vector<16x128xf32>
    %c2 = arith.constant 2 : index
    %c0_18 = arith.constant 0 : index
    %c0_19 = arith.constant 0 : index
    %24 = vector.load %arg4[%c2, %c0_18, %c0_19] : memref<4x1x128xf32, #tpu.memory_space<vmem>>, vector<1x1x128xf32>
    %25 = vector.shape_cast %24 : vector<1x1x128xf32> to vector<1x128xf32>
    %26 = vector.broadcast %25 : vector<1x128xf32> to vector<16x128xf32>
    %27 = arith.addf %23, %26 : vector<16x128xf32>
    %cst_20 = arith.constant 0.000000e+00 : f32
    %28 = vector.broadcast %cst_20 : f32 to vector<16x128xf32>
    %29 = arith.maximumf %27, %28 : vector<16x128xf32>
    %30 = arith.truncf %29 : vector<16x128xf32> to vector<16x128xbf16>
    %c2_21 = arith.constant 2 : index
    %c0_22 = arith.constant 0 : index
    %c0_23 = arith.constant 0 : index
    %31 = vector.load %arg3[%c2_21, %c0_22, %c0_23] : memref<3x128x128xbf16, #tpu.memory_space<vmem>>, vector<1x128x128xbf16>
    %32 = vector.shape_cast %31 : vector<1x128x128xbf16> to vector<128x128xbf16>
    %cst_24 = arith.constant dense<0.000000e+00> : vector<16x128xf32>
    %33 = tpu.matmul %30, %32, %cst_24 {dimension_numbers = #tpu.dot_dimension_numbers<[1], [0], [0], [1], [0, 0, 1, 1], [], []>} : vector<16x128xbf16>, vector<128x128xbf16>, vector<16x128xf32> -> vector<16x128xf32>
    %c3 = arith.constant 3 : index
    %c0_25 = arith.constant 0 : index
    %c0_26 = arith.constant 0 : index
    %34 = vector.load %arg4[%c3, %c0_25, %c0_26] : memref<4x1x128xf32, #tpu.memory_space<vmem>>, vector<1x1x128xf32>
    %35 = vector.shape_cast %34 : vector<1x1x128xf32> to vector<1x128xf32>
    %36 = vector.broadcast %35 : vector<1x128xf32> to vector<16x128xf32>
    %37 = arith.addf %33, %36 : vector<16x128xf32>
    %38 = vector.extract_strided_slice %37 {offsets = [0, 0], sizes = [16, 6], strides = [1, 1]} : vector<16x128xf32> to vector<16x6xf32>
    %c0_27 = arith.constant 0 : index
    %c0_28 = arith.constant 0 : index
    %39 = vector.load %arg5[%c0_27, %c0_28] : memref<16x6xf32, #tpu.memory_space<vmem>>, vector<16x6xf32>
    tpu.vector_store %arg5[%c0_27, %c0_28], %38 {strides = array<i32>} : memref<16x6xf32, #tpu.memory_space<vmem>>, vector<16x6xf32>,
    return
  }
  func.func @transform_0(%arg0: i32) -> (i32, i32) {
    %c0_i32 = arith.constant 0 : i32
    %c0_i32_0 = arith.constant 0 : i32
    return %arg0, %c0_i32 : i32, i32
  }
  func.func @transform_1(%arg0: i32) -> (i32, i32) {
    %c0_i32 = arith.constant 0 : i32
    %c0_i32_0 = arith.constant 0 : i32
    %c0_i32_1 = arith.constant 0 : i32
    return %c0_i32, %c0_i32_0 : i32, i32
  }
  func.func @transform_2(%arg0: i32) -> (i32, i32, i32) {
    %c0_i32 = arith.constant 0 : i32
    %c0_i32_0 = arith.constant 0 : i32
    %c0_i32_1 = arith.constant 0 : i32
    %c0_i32_2 = arith.constant 0 : i32
    return %c0_i32, %c0_i32_0, %c0_i32_1 : i32, i32, i32
  }
  func.func @transform_3(%arg0: i32) -> (i32, i32, i32) {
    %c0_i32 = arith.constant 0 : i32
    %c0_i32_0 = arith.constant 0 : i32
    %c0_i32_1 = arith.constant 0 : i32
    %c0_i32_2 = arith.constant 0 : i32
    return %c0_i32, %c0_i32_0, %c0_i32_1 : i32, i32, i32
  }
  func.func @transform_4(%arg0: i32) -> (i32, i32) {
    %c0_i32 = arith.constant 0 : i32
    %c0_i32_0 = arith.constant 0 : i32
    return %arg0, %c0_i32 : i32, i32
  }
}

</mosaic_0001>

<bundles_post_ra>
// kernel: tpu_custom_call.1
= control target key start
LH: loop header
LB: loop body
LE: loop exit
PB: predicated region body
PF: predicated region fallthrough
CT: control target
= control target key end

     0   :  { %9 = vsyncpa [#allocation3], 0  ;;  %s630_s15 = smov [#allocation2]   ;;  %s732_s0 = inlined_call_operand.vmem [shape: f32[16,8], index: 0, kind: input, shape index: {}]   ;;  %s733_s1 = inlined_call_operand.vmem [shape: bf16[8,128], index: 1, kind: input, shape index: {}]   ;;  %s734_s2 = inlined_call_operand.hbm [shape: bf16[3,128,128], index: 2, kind: input, shape index: {}]   ;;  %s735_s3 = inlined_call_operand.vmem [shape: f32[4,1,128], index: 3, kind: input, shape index: {}]   ;;  %s736_s4 = inlined_call_operand.vmem [shape: f32[16,6], index: 4, kind: output, shape index: {}]  }
   0x1   :  { %s19_s16 = sshll.u32 %s630_s15, 4  ;;  %s606_s19 = scalar_lea.hbm %s734_s2, 3072  ;;  %s20_s16 = int_to_ptr.vmem [resolvable:$true] %s19_s16 }
   0x2   :  { %p607_p0 = scmp.ne.s32.totalorder %s734_s2, %s606_s19  ;;  %p610_p1 = scmp.lt.u32.totalorder %s606_s19, %s734_s2 }
   0x4   :  { %p612_p2 = pnand %p610_p1, %p607_p0 }
   0x6   :  { %615 = shalt.err (!%p612_p2)
}
   0x7   :  { %s616_s24 = scalar_lea.vmem %s20_s16, 3072  ;;  %p621_p4 = scmp.lt.s32.totalorder %s20_s16, %s20_s16 }
   0x8   :  { %p617_p3 = scmp.ne.s32.totalorder %s20_s16, %s616_s24  ;;  %p622_p5 = scmp.lt.s32.totalorder %s616_s24, %s616_s24 }
   0xa   :  { %p623_p6 = por %p622_p5, %p621_p4 }
   0xc   :  { %p624_p7 = pnand %p623_p6, %p617_p3 }
   0xe   :  { %627 = shalt.err (!%p624_p7)
}
   0xf   :  { %s631_s25 = smov 64   ;;  %s632_s26 = smov 4  }
  0x10   :  { %25 = dma.hbm_to_vmem [thread:$0]  %s734_s2, 3072, %s20_s16, [#allocation3], %s631_s25, %s631_s25, %s632_s26  }
  0x11   :  { %628 = dma.done.wait [#allocation3], 3072  }
  0x12   :  { %629 = vsyncadd [#allocation3], 4294964224  ;;  %v633_v0 = vmov 0.0   ;;  %vm634_vm0 = vmmov 0   ;;  %vm47_vm1 = vcmask 1043456   ;;  %v32_v2 = vld [vmem:[%s732_s0] sm:$0xff] }
  0x13   :  { %511 = vmatprep.subr.bf16.mxu0 %v633_v0  ;;  %513 = vmatprep.mubr.msk.bf16.mxu0 %vm634_vm0, %v633_v0  ;;  %v35_v1 = vld [vmem:[%s733_s1] sm:$0xf]  ;;  %v33_v3 = vld [vmem:[%s732_s0 + $0x8] sm:$0xff]  ;;  %vm43_vm2 = vcmask 64512   ;;  %v584_v8 = vld [vmem:[#allocation2 + $0x10] sm:$0xff]   ;;  %vm442_vm3 = vcmask 48128  }
  0x14   :  { %517 = vmatprep.subr.bf16.mxu1 %v633_v0  ;;  %533 = vmatprep.mubr.msk.bf16.mxu1 %vm634_vm0, %v633_v0  ;;  %v49_v4 = vsel %vm47_vm1, %v35_v1, 0  ;;  %v34_v5 = vpack.c.bf16 %v33_v3, %v32_v2  ;;  %v582_v6 = vld [vmem:[#allocation2] sm:$0xff]   ;;  %v583_v7 = vld [vmem:[#allocation2 + $0x8] sm:$0xff]   ;;  %v585_v9 = vld [vmem:[#allocation2 + $0x18] sm:$0xff]  }
  0x15   :  { %512 = vmatpush3.bf16.msra.mxu0 %v49_v4  ;;  %518 = vmatpush3.bf16.msra.mxu1 %v582_v6  ;;  %v586_v10 = vld [vmem:[#allocation2 + $0x20] sm:$0xff]   ;;  %v587_v11 = vld [vmem:[#allocation2 + $0x28] sm:$0xff]   ;;  %v588_v12 = vld [vmem:[#allocation2 + $0x30] sm:$0xff]  }
  0x16   :  { %537 = vmatprep.subr.bf16.mxu0 %v633_v0  ;;  %519 = vmatprep.subr.bf16.mxu1 %v633_v0  ;;  %v589_v13 = vld [vmem:[#allocation2 + $0x38] sm:$0xff]   ;;  %v590_v14 = vld [vmem:[#allocation2 + $0x40] sm:$0xff]   ;;  %v591_v15 = vld [vmem:[#allocation2 + $0x48] sm:$0xff]  }
  0x17   :  { %v592_v16 = vld [vmem:[#allocation2 + $0x50] sm:$0xff]   ;;  %v593_v17 = vld [vmem:[#allocation2 + $0x58] sm:$0xff]   ;;  %v594_v18 = vld [vmem:[#allocation2 + $0x60] sm:$0xff]  }
  0x18   :  { %514 = vmatmul.mubr.msk.bf16.vlgmr.msra.gmra.mrb[0].mxu0 %vm43_vm2, %v34_v5  ;;  %v595_v19 = vld [vmem:[#allocation2 + $0x68] sm:$0xff]   ;;  %v450_v20 = vld [vmem:[%s735_s3] ss:$0 sm:$0xff]  ;;  %v596_v30 = vld [vmem:[#allocation2 + $0x70] sm:$0xff]  }
  0x19   :  { %553 = vmatprep.mubr.msk.bf16.mxu0 %vm634_vm0, %v633_v0  ;;  %520 = vmatpush3.bf16.msra.mxu1 %v583_v7  ;;  %v597_v31 = vld [vmem:[#allocation2 + $0x78] sm:$0xff]   ;;  %v598_v32 = vld [vmem:[#allocation2 + $0x80] sm:$0xff]   ;;  %v599_v33 = vld [vmem:[#allocation2 + $0x88] sm:$0xff]  }
  0x1a   :  { %521 = vmatprep.subr.bf16.mxu1 %v633_v0  ;;  %538 = vmatpush3.bf16.msra.mxu0 %v590_v14  ;;  %v600_v34 = vld [vmem:[#allocation2 + $0x90] sm:$0xff]   ;;  %v601_v35 = vld [vmem:[#allocation2 + $0x98] sm:$0xff]   ;;  %v602_v36 = vld [vmem:[#allocation2 + $0xa0] sm:$0xff]  }
  0x1b   :  { %539 = vmatprep.subr.bf16.mxu0 %v633_v0  ;;  %v603_v37 = vld [vmem:[#allocation2 + $0xa8] sm:$0xff]   ;;  %v453_v38 = vld [vmem:[%s735_s3 + $0x1] ss:$0 sm:$0xff]  ;;  %v604_v48 = vld [vmem:[#allocation2 + $0xb0] sm:$0xff]  }
  0x1c   :  { %v605_v49 = vld [vmem:[#allocation2 + $0xb8] sm:$0xff]   ;;  %v463_v50 = vld [vmem:[%s735_s3 + $0x2] ss:$0 sm:$0xff]  ;;  %v473_v60 = vld [vmem:[%s735_s3 + $0x3] ss:$0 sm:$0xff] }
  0x1d   :  { %522 = vmatpush3.bf16.msra.mxu1 %v584_v8 }
  0x1e   :  { %523 = vmatprep.subr.bf16.mxu1 %v633_v0  ;;  %540 = vmatpush3.bf16.msra.mxu0 %v591_v15 }
  0x1f   :  { %541 = vmatprep.subr.bf16.mxu0 %v633_v0 }
  0x21   :  { %524 = vmatpush3.bf16.msra.mxu1 %v585_v9 }
  0x22   :  { %525 = vmatprep.subr.bf16.mxu1 %v633_v0  ;;  %542 = vmatpush3.bf16.msra.mxu0 %v592_v16 }
  0x23   :  { %543 = vmatprep.subr.bf16.mxu0 %v633_v0 }
  0x25   :  { %526 = vmatpush3.bf16.msra.mxu1 %v586_v10 }
  0x26   :  { %527 = vmatprep.subr.bf16.mxu1 %v633_v0  ;;  %544 = vmatpush3.bf16.msra.mxu0 %v593_v17 }
  0x27   :  { %545 = vmatprep.subr.bf16.mxu0 %v633_v0 }
  0x29   :  { %528 = vmatpush3.bf16.msra.mxu1 %v587_v11 }
  0x2a   :  { %529 = vmatprep.subr.bf16.mxu1 %v633_v0  ;;  %546 = vmatpush3.bf16.msra.mxu0 %v594_v18 }
  0x2b   :  { %547 = vmatprep.subr.bf16.mxu0 %v633_v0 }
  0x2d   :  { %530 = vmatpush3.bf16.msra.mxu1 %v588_v12 }
  0x2e   :  { %531 = vmatprep.subr.bf16.mxu1 %v633_v0  ;;  %548 = vmatpush3.bf16.msra.mxu0 %v595_v19 }
  0x2f   :  { %549 = vmatprep.subr.bf16.mxu0 %v633_v0 }
  0x31   :  { %532 = vmatpush3.bf16.msra.mxu1 %v589_v13 }
  0x32   :  { %557 = vmatprep.subr.bf16.mxu1 %v633_v0  ;;  %550 = vmatpush3.bf16.msra.mxu0 %v596_v30 }
  0x33   :  { %551 = vmatprep.subr.bf16.mxu0 %v633_v0 }
  0x36   :  { %552 = vmatpush3.bf16.msra.mxu0 %v597_v31 }
  0xeb   :  { %v85_v21 = vpop.f32.mrb[0].mxu0 }
  0xec   :  { %v86_v22 = vadd.f32 %v450_v20, %v85_v21  ;;  %v515_v23 = vpop.f32.mrb[1].mxu0 }
  0xed   :  { %v88_v24 = vpop.f32.mrb[2].mxu0 }
  0xee   :  { %v89_v25 = vadd.f32 %v450_v20, %v88_v24  ;;  %v516_v26 = vpop.f32.mrb[3].mxu0  ;;  %v92_v27 = vmax.f32 %v86_v22, 0.0 }
  0xf0   :  { %v93_v28 = vmax.f32 %v89_v25, 0.0 }
  0xf2   :  { %v94_v29 = vpack.c.bf16 %v93_v28, %v92_v27 }
  0xf4   :  { %534 = vmatmul.mubr.bf16.vlgmr.msra.gmra.mrb[0].mxu1 %v94_v29 }
  0xf5   :  { %573 = vmatprep.mubr.msk.bf16.mxu1 %vm634_vm0, %v633_v0  ;;  %558 = vmatpush3.bf16.msra.mxu1 %v598_v32 }
  0xf6   :  { %559 = vmatprep.subr.bf16.mxu1 %v633_v0 }
  0xf9   :  { %560 = vmatpush3.bf16.msra.mxu1 %v599_v33 }
  0xfa   :  { %561 = vmatprep.subr.bf16.mxu1 %v633_v0 }
  0xfd   :  { %562 = vmatpush3.bf16.msra.mxu1 %v600_v34 }
  0xfe   :  { %563 = vmatprep.subr.bf16.mxu1 %v633_v0 }
 0x101   :  { %564 = vmatpush3.bf16.msra.mxu1 %v601_v35 }
 0x102   :  { %565 = vmatprep.subr.bf16.mxu1 %v633_v0 }
 0x105   :  { %566 = vmatpush3.bf16.msra.mxu1 %v602_v36 }
 0x106   :  { %567 = vmatprep.subr.bf16.mxu1 %v633_v0 }
 0x109   :  { %568 = vmatpush3.bf16.msra.mxu1 %v603_v37 }
 0x10a   :  { %569 = vmatprep.subr.bf16.mxu1 %v633_v0 }
 0x10d   :  { %570 = vmatpush3.bf16.msra.mxu1 %v604_v48 }
 0x10e   :  { %571 = vmatprep.subr.bf16.mxu1 %v633_v0 }
 0x111   :  { %572 = vmatpush3.bf16.msra.mxu1 %v605_v49 }
 0x1c7   :  { %v201_v39 = vpop.f32.mrb[0].mxu1 }
 0x1c8   :  { %v202_v40 = vadd.f32 %v453_v38, %v201_v39  ;;  %v535_v41 = vpop.f32.mrb[1].mxu1 }
 0x1c9   :  { %v204_v42 = vpop.f32.mrb[2].mxu1 }
 0x1ca   :  { %v205_v43 = vadd.f32 %v453_v38, %v204_v42  ;;  %v536_v44 = vpop.f32.mrb[3].mxu1  ;;  %v208_v45 = vmax.f32 %v202_v40, 0.0 }
 0x1cc   :  { %v209_v46 = vmax.f32 %v205_v43, 0.0 }
 0x1ce   :  { %v210_v47 = vpack.c.bf16 %v209_v46, %v208_v45 }
 0x1d0   :  { %554 = vmatmul.mubr.bf16.vlgmr.msra.gmra.mrb[4].mxu0 %v210_v47 }
 0x2a3   :  { %v318_v51 = vpop.f32.mrb[4].mxu0 }
 0x2a4   :  { %v319_v52 = vadd.f32 %v463_v50, %v318_v51  ;;  %v555_v53 = vpop.f32.mrb[5].mxu0 }
 0x2a5   :  { %v321_v54 = vpop.f32.mrb[6].mxu0 }
 0x2a6   :  { %v322_v55 = vadd.f32 %v463_v50, %v321_v54  ;;  %v556_v56 = vpop.f32.mrb[7].mxu0  ;;  %v325_v57 = vmax.f32 %v319_v52, 0.0 }
 0x2a8   :  { %v326_v58 = vmax.f32 %v322_v55, 0.0 }
 0x2aa   :  { %v327_v59 = vpack.c.bf16 %v326_v58, %v325_v57 }
 0x2ac   :  { %574 = vmatmul.mubr.bf16.vlgmr.msra.gmra.mrb[4].mxu1 %v327_v59 }
 0x37f   :  { %v435_v61 = vpop.f32.mrb[4].mxu1 }
 0x380   :  { %v436_v62 = vadd.f32 %v473_v60, %v435_v61  ;;  %v575_v63 = vpop.f32.mrb[5].mxu1 }
 0x381   :  { %v438_v0 = vpop.f32.mrb[6].mxu1 }
 0x382   :  { %443 = vst.msk [vmem:[%s736_s4] sm:$0xff] %vm442_vm3, %v436_v62  ;;  %v439_v1 = vadd.f32 %v473_v60, %v438_v0  ;;  %v576_v2 = vpop.f32.mrb[7].mxu1 }
 0x384   :  { %444 = vst.msk [vmem:[%s736_s4 + $0x8] sm:$0xff] %vm442_vm3, %v439_v1 }
 0x385   :  { %449 = vsyncpa [#allocation3], 1 }

</bundles_post_ra>
